<compile_context>
chip_gen: v7x
topology: tpu7x:2x2x1
jax: 0.10.0
libtpu: 0.0.40
codegen_flags: <defaults>
</compile_context>

<pallas_src>
import math

import jax
import jax.numpy as jnp
from jax.experimental import pallas as pl
from jax.experimental.pallas import tpu as pltpu


_MIB = 1024 * 1024
# VMEM budget that fits every generation (v7x: 64 MiB per TC; v5e/v6e: 128 MiB).
_VMEM_BUDGET = 60 * _MIB


def _round_up(v, m):
    return (v + m - 1) // m * m


def _mlp_kernel_scalar_out(x_ref, w1_ref, w2_ref, w3_ref, out_ref):
    # x_ref: (TB, D) bf16 (or f32)   w1_ref: (D, H) bf16   w2_ref: (H, H) bf16
    # w3_ref: (1, H) f32 (PyTorch row layout, out_dim == 1)   out_ref: (TB, 1) f32
    x = x_ref[...]
    if x.dtype != jnp.bfloat16:          # no-op when the caller streams bf16
        x = x.astype(jnp.bfloat16)
    h1 = jnp.maximum(
        jnp.dot(x, w1_ref[...], preferred_element_type=jnp.float32), 0.0)
    h2 = jnp.maximum(
        jnp.dot(h1.astype(jnp.bfloat16), w2_ref[...],
                preferred_element_type=jnp.float32), 0.0)
    # out_dim == 1: VPU multiply + cross-lane reduce in f32 instead of a
    # 1-column MXU matvec; keeps the final layer f32 like the O > 1 path.
    out = jnp.sum(h2 * w3_ref[...], axis=-1, keepdims=True)
    out_ref[...] = out.astype(out_ref.dtype)


def _mlp_kernel_general(x_ref, w1_ref, w2_ref, w3_ref, out_ref):
    # General out_dim path: w3_ref is (H, O) f32; final matmul stays f32 so
    # both paths share the same precision recipe.  Compute is hidden under
    # the x DMA, so the f32 matmul costs nothing end-to-end.
    x = x_ref[...]
    if x.dtype != jnp.bfloat16:
        x = x.astype(jnp.bfloat16)
    h1 = jnp.maximum(
        jnp.dot(x, w1_ref[...], preferred_element_type=jnp.float32), 0.0)
    h2 = jnp.maximum(
        jnp.dot(h1.astype(jnp.bfloat16), w2_ref[...],
                preferred_element_type=jnp.float32), 0.0)
    out = jnp.dot(h2, w3_ref[...], preferred_element_type=jnp.float32)
    out_ref[...] = out.astype(out_ref.dtype)


def prepare_params(w1, w2, w3):
    """One-time conversion from PyTorch [out, in] layout to kernel layout.

    Done once at init, NOT per forward call.  W1/W2 are pre-transposed bf16
    for the MXU; W3 stays f32 in both layouts (VPU row for O == 1, (H, O)
    matrix otherwise) so the final projection is f32 regardless of out_dim.
    """
    w1 = jnp.asarray(w1)
    w2 = jnp.asarray(w2)
    w3 = jnp.asarray(w3)
    out_dim = w3.shape[0]
    params = {
        "w1t": w1.T.astype(jnp.bfloat16),            # (D, H)
        "w2t": w2.T.astype(jnp.bfloat16),            # (H, H)
        "out_dim": out_dim,
    }
    if out_dim == 1:
        params["w3"] = w3.astype(jnp.float32)        # (1, H) row, VPU reduce
    else:
        params["w3"] = w3.T.astype(jnp.float32)      # (H, O), f32 matmul
    return params


def _vmem_bytes(tb, D, H, O, x_itemsize, w3_bytes):
    """Estimate of the kernel's VMEM working set (double-buffered pipeline)."""
    x_buf = 2 * tb * D * x_itemsize                  # x tile, 2 buffers
    out_buf = 2 * tb * O * 4                         # out tile, 2 buffers
    w_buf = 2 * (D * H * 2 + H * H * 2 + w3_bytes)   # weights (default 2 bufs)
    interm = (tb * D * 2) if x_itemsize > 2 else 0   # bf16 copy of f32 x
    interm += 2 * tb * H * 4 + tb * O * 4            # h1, h2, out temporaries
    return x_buf + out_buf + w_buf + interm


def _choose_tile(B, tile_b, D, H, O, x_itemsize, w3_bytes):
    tb = max(8, min(_round_up(tile_b, 8), _round_up(B, 8)))
    # Shrink until the double-buffered working set fits the VMEM budget.
    while tb > 8 and _vmem_bytes(tb, D, H, O, x_itemsize, w3_bytes) > _VMEM_BUDGET:
        tb = max(8, _round_up(tb // 2, 8))
    # Prefer >= 4 grid steps (>= 2 per TensorCore on v7x, and real pipelining
    # everywhere) instead of one giant padded tile for small batches.
    while tb > 8 and _round_up(B, tb) // tb < 4:
        tb = max(8, _round_up(tb // 2, 8))
    # Even grid length so v7x's two TensorCores get equal work.
    grid = _round_up(B, tb) // tb
    if grid > 1 and grid % 2 == 1 and tb >= 16:
        tb = max(8, _round_up(tb // 2, 8))
    return tb


def mlp_forward(x, params, *, tile_b=None):
    """x: [B, D], preferably bf16 (cast at the producer); returns [B, O] f32."""
    B, D = x.shape
    w1t, w2t, w3 = params["w1t"], params["w2t"], params["w3"]
    H = w1t.shape[1]
    O = params["out_dim"]
    scalar_out = (O == 1)

    x_itemsize = jnp.dtype(x.dtype).itemsize
    w3_bytes = w3.size * jnp.dtype(w3.dtype).itemsize

    if tile_b is None:
        # bf16 activations fit 2048-row tiles on every generation (~30 MiB at
        # D=3072); f32 activations are capped at 1024 so the f32 double-buffer
        # + cast scratch stays inside v7x's 64 MiB per-TC VMEM.
        tile_b = 2048 if x_itemsize <= 2 else 1024

    tb = _choose_tile(B, tile_b, D, H, O, x_itemsize, w3_bytes)
    b_pad = _round_up(B, tb)
    if b_pad != B:
        x = jnp.pad(x, ((0, b_pad - B), (0, 0)))

    vmem_limit = int(min(
        _VMEM_BUDGET,
        max(32 * _MIB,
            _vmem_bytes(tb, D, H, O, x_itemsize, w3_bytes) * 5 // 4 + 2 * _MIB)))

    kernel = _mlp_kernel_scalar_out if scalar_out else _mlp_kernel_general
    w3_block = (1, H) if scalar_out else (H, O)

    out = pl.pallas_call(
        kernel,
        out_shape=jax.ShapeDtypeStruct((b_pad, O), jnp.float32),
        grid_spec=pltpu.PrefetchScalarGridSpec(
            num_scalar_prefetch=0,
            grid=(b_pad // tb,),
            in_specs=[
                pl.BlockSpec((tb, D), lambda i: (i, 0)),   # x: moves with grid
                pl.BlockSpec((D, H), lambda i: (0, 0)),    # weights: resident
                pl.BlockSpec((H, H), lambda i: (0, 0)),
                pl.BlockSpec(w3_block, lambda i: (0, 0)),
            ],
            out_specs=pl.BlockSpec((tb, O), lambda i: (i, 0)),
        ),
        compiler_params=pltpu.CompilerParams(
            dimension_semantics=("parallel",),             # megacore on v7x
            vmem_limit_bytes=vmem_limit,
        ),
    )(x, w1t, w2t, w3)

    if b_pad != B:
        out = out[:B]
    return out


def init_mlp_params(key, input_dim, hidden_dim, out_dim):
    """Matches MLP.reset_parameters: normal(std=1/sqrt(fan_in)), no biases."""
    k1, k2, k3 = jax.random.split(key, 3)
    w1 = jax.random.normal(k1, (hidden_dim, input_dim), jnp.float32) / math.sqrt(input_dim)
    w2 = jax.random.normal(k2, (hidden_dim, hidden_dim), jnp.float32) / math.sqrt(hidden_dim)
    w3 = jax.random.normal(k3, (out_dim, hidden_dim), jnp.float32) / math.sqrt(hidden_dim)
    return w1, w2, w3


if __name__ == "__main__":
    # Small shapes consistent with the module (defaults 3072/128/1, scaled
    # down).  batch=250 is deliberately not a multiple of the tile (exercises
    # padding) and yields a 4-step grid via the auto tile selection.
    batch = 250
    input_dim = 512
    hidden_dim = 128
    out_dim = 1

    key = jax.random.PRNGKey(0)
    kx, kp = jax.random.split(key)
    # Producer-side cast: x "lives" as bf16 so the kernel streams half the
    # bytes from HBM (this is NOT a per-forward-call wrapper cast).
    x = jax.random.normal(kx, (batch, input_dim), jnp.float32).astype(jnp.bfloat16)
    w1, w2, w3 = init_mlp_params(kp, input_dim, hidden_dim, out_dim)
    params = prepare_params(w1, w2, w3)

    out = mlp_forward(x, params)
    out = jax.block_until_ready(out)

    # Matched-precision pure-JAX reference (bf16 MXU inputs, f32 accumulation,
    # f32 final projection), computed at full f32 precision on the rounded
    # inputs.
    hp = jax.lax.Precision.HIGHEST
    xf = x.astype(jnp.float32)
    w1b = w1.astype(jnp.bfloat16).astype(jnp.float32)
    w2b = w2.astype(jnp.bfloat16).astype(jnp.float32)
    h1 = jnp.maximum(jnp.dot(xf, w1b.T, precision=hp), 0.0)
    h2 = jnp.maximum(
        jnp.dot(h1.astype(jnp.bfloat16).astype(jnp.float32), w2b.T, precision=hp), 0.0)
    ref = jnp.dot(h2, w3.T, precision=hp)

    assert out.shape == (batch, out_dim)
    assert jnp.allclose(out, ref, atol=1e-2, rtol=1e-2), float(
        jnp.max(jnp.abs(out - ref)))

    print("KERNEL_OK")
</pallas_src>

<mosaic_0001>
module attributes {stable_mosaic.version = 11 : i64} {
  func.func @_mlp_kernel_scalar_out(%arg0: i32, %arg1: memref<64x512xbf16, #tpu.memory_space<vmem>>, %arg2: memref<512x128xbf16, #tpu.memory_space<vmem>>, %arg3: memref<128x128xbf16, #tpu.memory_space<vmem>>, %arg4: memref<1x128xf32, #tpu.memory_space<vmem>>, %arg5: memref<64x1xf32, #tpu.memory_space<vmem>>) attributes {dimension_semantics = [#tpu.dimension_semantics<parallel>], iteration_bounds = array<i64: 4>, scalar_prefetch = 0 : i64, scratch_operands = 0 : i64, tpu.core_type = #tpu.core_type<tc>, window_params = [{transform_indices = @transform_0, window_bounds = array<i64: 64, 512>}, {pipeline_mode = #tpu.pipeline_mode<synchronous>, transform_indices = @transform_1, window_bounds = array<i64: 512, 128>}, {pipeline_mode = #tpu.pipeline_mode<synchronous>, transform_indices = @transform_2, window_bounds = array<i64: 128, 128>}, {pipeline_mode = #tpu.pipeline_mode<synchronous>, transform_indices = @transform_3, window_bounds = array<i64: 1, 128>}, {transform_indices = @transform_4, window_bounds = array<i64: 64, 1>}]} {
    %c0 = arith.constant 0 : index
    %c0_0 = arith.constant 0 : index
    %0 = vector.load %arg1[%c0, %c0_0] : memref<64x512xbf16, #tpu.memory_space<vmem>>, vector<64x512xbf16>
    %c0_1 = arith.constant 0 : index
    %c0_2 = arith.constant 0 : index
    %1 = vector.load %arg2[%c0_1, %c0_2] : memref<512x128xbf16, #tpu.memory_space<vmem>>, vector<512x128xbf16>
    %cst = arith.constant dense<0.000000e+00> : vector<64x128xf32>
    %2 = tpu.matmul %0, %1, %cst {dimension_numbers = #tpu.dot_dimension_numbers<[1], [0], [0], [1], [0, 0, 1, 1], [], []>} : vector<64x512xbf16>, vector<512x128xbf16>, vector<64x128xf32> -> vector<64x128xf32>
    %cst_3 = arith.constant 0.000000e+00 : f32
    %3 = vector.broadcast %cst_3 : f32 to vector<64x128xf32>
    %4 = arith.maximumf %2, %3 : vector<64x128xf32>
    %5 = arith.truncf %4 : vector<64x128xf32> to vector<64x128xbf16>
    %c0_4 = arith.constant 0 : index
    %c0_5 = arith.constant 0 : index
    %6 = vector.load %arg3[%c0_4, %c0_5] : memref<128x128xbf16, #tpu.memory_space<vmem>>, vector<128x128xbf16>
    %cst_6 = arith.constant dense<0.000000e+00> : vector<64x128xf32>
    %7 = tpu.matmul %5, %6, %cst_6 {dimension_numbers = #tpu.dot_dimension_numbers<[1], [0], [0], [1], [0, 0, 1, 1], [], []>} : vector<64x128xbf16>, vector<128x128xbf16>, vector<64x128xf32> -> vector<64x128xf32>
    %cst_7 = arith.constant 0.000000e+00 : f32
    %8 = vector.broadcast %cst_7 : f32 to vector<64x128xf32>
    %9 = arith.maximumf %7, %8 : vector<64x128xf32>
    %c0_8 = arith.constant 0 : index
    %c0_9 = arith.constant 0 : index
    %10 = vector.load %arg4[%c0_8, %c0_9] : memref<1x128xf32, #tpu.memory_space<vmem>>, vector<1x128xf32>
    %11 = vector.broadcast %10 : vector<1x128xf32> to vector<64x128xf32>
    %12 = arith.mulf %9, %11 : vector<64x128xf32>
    %cst_10 = arith.constant dense<0.000000e+00> : vector<64xf32>
    %13 = vector.multi_reduction <add>, %12, %cst_10 [1] : vector<64x128xf32> to vector<64xf32>
    %14 = vector.shape_cast %13 : vector<64xf32> to vector<64x1xf32>
    %c0_11 = arith.constant 0 : index
    %c0_12 = arith.constant 0 : index
    %15 = vector.load %arg5[%c0_11, %c0_12] : memref<64x1xf32, #tpu.memory_space<vmem>>, vector<64x1xf32>
    tpu.vector_store %arg5[%c0_11, %c0_12], %14 {strides = array<i32>} : memref<64x1xf32, #tpu.memory_space<vmem>>, vector<64x1xf32>,
    return
  }
  func.func @transform_0(%arg0: i32) -> (i32, i32) {
    %c0_i32 = arith.constant 0 : i32
    %c0_i32_0 = arith.constant 0 : i32
    return %arg0, %c0_i32 : i32, i32
  }
  func.func @transform_1(%arg0: i32) -> (i32, i32) {
    %c0_i32 = arith.constant 0 : i32
    %c0_i32_0 = arith.constant 0 : i32
    %c0_i32_1 = arith.constant 0 : i32
    return %c0_i32, %c0_i32_0 : i32, i32
  }
  func.func @transform_2(%arg0: i32) -> (i32, i32) {
    %c0_i32 = arith.constant 0 : i32
    %c0_i32_0 = arith.constant 0 : i32
    %c0_i32_1 = arith.constant 0 : i32
    return %c0_i32, %c0_i32_0 : i32, i32
  }
  func.func @transform_3(%arg0: i32) -> (i32, i32) {
    %c0_i32 = arith.constant 0 : i32
    %c0_i32_0 = arith.constant 0 : i32
    %c0_i32_1 = arith.constant 0 : i32
    return %c0_i32, %c0_i32_0 : i32, i32
  }
  func.func @transform_4(%arg0: i32) -> (i32, i32) {
    %c0_i32 = arith.constant 0 : i32
    %c0_i32_0 = arith.constant 0 : i32
    return %arg0, %c0_i32 : i32, i32
  }
}

</mosaic_0001>

<bundles_post_ra>
// kernel: tpu_custom_call.1
= control target key start
LH: loop header
LB: loop body
LE: loop exit
PB: predicated region body
PF: predicated region fallthrough
CT: control target
= control target key end

     0   :  { %9 = vsyncpa [#allocation3], 0  ;;  %s1710_s0 = inlined_call_operand.hbm [shape: bf16[256,512], index: 0, kind: input, shape index: {}]   ;;  %s1711_s1 = inlined_call_operand.hbm [shape: bf16[512,128], index: 1, kind: input, shape index: {}]   ;;  %s1712_s2 = inlined_call_operand.hbm [shape: bf16[128,128], index: 2, kind: input, shape index: {}]   ;;  %s1713_s3 = inlined_call_operand.vmem [shape: f32[1,128], index: 3, kind: input, shape index: {}]   ;;  %s1714_s4 = inlined_call_operand.vmem [shape: f32[256,1], index: 4, kind: output, shape index: {}]  }
   0x1   :  { %11 = vsyncpa [#allocation3 + $0x1], 0 }
   0x2   :  { %12 = vsyncpa [#allocation5], 0  ;;  %s1503_s15 = smov 0   ;;  %s1505_s16 = smov 0  }
   0x3   :  { %s1507_s17 = smov 0   ;;  %s1509_s18 = smov 0  }
   0x4 LB: > { %s1008_s19 = sadd.s32 4294967295, %s1469_s18   ;;  %p38_p0 = scmp.ne.s32.totalorder %s1461_s16, %s1457_s15  ;;  %s1469_s18 = sphi %s1509_s18, %s1730_s18   ;;  %s1465_s17 = sphi %s1507_s17, %s1729_s17   ;;  %s1461_s16 = sphi %s1505_s16, %s1728_s16   ;;  %s1457_s15 = sphi %s1503_s15, %s1727_s15  }
   0x5   : > { %p1525_p1 = scmp.eq.s32.totalorder %s1008_s19, 0  ;;  %p1010_p2 = scmp.ge.s32.totalorder %s1469_s18, 1 }
   0x6   : > { %p138_p3 = scmp.lt.s32.totalorder %s1469_s18, 5  ;;  %s1471_s23 = smov [#allocation4]  }
   0x7   : > { %s1719_s20 = scalar_select %p1525_p1, 1, 0 }
   0x8   : > { %p1533_p4 = por %p1525_p1, %p38_p0  ;;  %p1537_p5 = pnand %p1010_p2, %p138_p3 }
   0x9   : > { %s150_s24 = sshll.u32 %s1471_s23, 4  ;;  %s1472_s26 = smov [#allocation6]   ;;  %s151_s24 = int_to_ptr.vmem [resolvable:$true] %s150_s24 }
   0xa   : > { %s1720_s21 = scalar_select %p1533_p4, 1, 0 }
   0xb   : > { %s1721_s22 = scalar_select %p1537_p5, 1, 0 }
   0xc   : > { %p1227_p6 = pneg %p1537_p5  ;;  %s163_s27 = sshll.u32 %s1472_s26, 4  ;;  %s1549_s27 = int_to_ptr.vmem [resolvable:$true] %s163_s27 }
   0xd   : > { %s1345_s30 = scalar_lea.hbm %s1711_s1, 4096 }
   0xe   : > { %p1545_p7 = pnand %p1227_p6, %p1525_p1  ;;  %p1346_p8 = scmp.ne.s32.totalorder %s1711_s1, %s1345_s30 }
   0xf   : > { %p1352_p12 = scmp.lt.u32.totalorder %s1345_s30, %s1711_s1 }
  0x10   : > { %p1347_p9 = pneg %p1545_p7 }
  0x12   : > { %p1348_p10 = pnand %p1347_p9, %p1346_p8 }
  0x14   : > { %p1349_p11 = pneg %p1348_p10 }
  0x16   : > { %p1354_p13 = pnand %p1352_p12, %p1349_p11 }
  0x18   : > { %1357 = shalt.err (!%p1354_p13)
}
  0x19   : > { %s1358_s9 = scalar_lea.vmem %s151_s24, 4096  ;;  %p1366_p6 = scmp.lt.s32.totalorder %s151_s24, %s151_s24 }
  0x1a   : > { %p1359_p0 = scmp.ne.s32.totalorder %s151_s24, %s1358_s9  ;;  %p1367_p1 = scmp.lt.s32.totalorder %s1358_s9, %s1358_s9 }
  0x1c   : > { %p1361_p2 = pnand %p1359_p0, %p1347_p9  ;;  %p1368_p4 = por %p1367_p1, %p1366_p6 }
  0x1e   : > { %p1362_p3 = pneg %p1361_p2 }
  0x20   : > { %p1369_p5 = pnand %p1368_p4, %p1362_p3 }
  0x22   : > { %1372 = shalt.err (!%p1369_p5)
}
  0x23   : > { %s1473_s10 = smov 64   ;;  %s1474_s11 = smov 4  }
  0x24   : > { %1230 = dma.hbm_to_vmem [thread:$0]  (!%p1545_p7), %s1711_s1, 4096, %s151_s24, [#allocation5], %s1473_s10, %s1473_s10, %s1474_s11  }
  0x25   : > { %s1373_s23 = scalar_lea.hbm %s1712_s2, 1024 }
  0x26   : > { %p1374_p8 = scmp.ne.s32.totalorder %s1712_s2, %s1373_s23  ;;  %p1380_p5 = scmp.lt.u32.totalorder %s1373_s23, %s1712_s2 }
  0x28   : > { %p1376_p1 = pnand %p1374_p8, %p1347_p9 }
  0x2a   : > { %p1377_p4 = pneg %p1376_p1 }
  0x2c   : > { %p1382_p10 = pnand %p1380_p5, %p1377_p4 }
  0x2e   : > { %1385 = shalt.err (!%p1382_p10)
}
  0x2f   : > { %s1386_s24 = scalar_lea.vmem %s1549_s27, 1024  ;;  %p1394_p0 = scmp.lt.s32.totalorder %s1549_s27, %s1549_s27 }
  0x30   : > { %p1387_p11 = scmp.ne.s32.totalorder %s1549_s27, %s1386_s24  ;;  %p1395_p2 = scmp.lt.s32.totalorder %s1386_s24, %s1386_s24 }
  0x32   : > { %p1389_p12 = pnand %p1387_p11, %p1347_p9  ;;  %p1396_p3 = por %p1395_p2, %p1394_p0 }
  0x34   : > { %p1390_p13 = pneg %p1389_p12 }
  0x36   : > { %p1397_p6 = pnand %p1396_p3, %p1390_p13 }
  0x38   : > { %1400 = shalt.err (!%p1397_p6)
}
  0x39   : > { %1233 = dma.hbm_to_vmem [thread:$0]  (!%p1545_p7), %s1712_s2, 1024, %s1549_s27, [#allocation5], %s1473_s10, %s1473_s10, %s1474_s11  }
  0x3a   : > { %s1599_s7 = sadd.s32 1, %s1469_s18   ;;  %s25_s8 = sadd.s32 1, %s1465_s17 }
  0x3b   : > { %s22_s25 = ssub.s32 %s1469_s18, %s1599_s7  ;;  %p32_p9 = scmp.ne.s32.totalorder %s1465_s17, %s1461_s16 }
  0x3c   : > { %p23_p8 = scmp.eq.s32.totalorder %s22_s25, 0  ;;  %p33_p1 = scmp.eq.s32.totalorder %s1469_s18, 0 }
  0x3d   : > { %p1240_p4 = scmp.lt.s32.totalorder %s1469_s18, 4  ;;  %s180_s9 = sand.u32 1, %s1465_s17  }
  0x3e   : > { %s1610_s12 = scalar_select %p23_p8, %s1465_s17, %s25_s8  }
  0x3f   : > { %p34_p5 = por %p33_p1, %p32_p9  ;;  %s1014_s13 = sshll.u32 %s180_s9, 7 }
  0x40   : > { %s1084_s14 = sshll.u32 %s1469_s18, 11  ;;  %s184_s27 = scalar_lea.vmem [#allocation2], %s1014_s13 }
  0x41   : > { %s1616_s26 = scalar_lea.hbm %s1710_s0, %s1084_s14  ;;  %s192_s10 = sshll.u32 %s184_s27, 4  ;;  %s1622_s10 = int_to_ptr.vmem [resolvable:$true] %s192_s10 }
  0x42   : > { %p1618_p7 = pnand %p1240_p4, %p34_p5  ;;  %s1624_s28 = scalar_lea.sflag [#allocation3], %s180_s9 }
  0x43   : > { %s1401_s29 = scalar_lea.hbm %s1616_s26, 2048  ;;  %s1406_s5 = scalar_lea.hbm %s1710_s0, 8192 }
  0x44   : > { %p1402_p10 = scmp.ne.s32.totalorder %s1616_s26, %s1401_s29  ;;  %p1403_p11 = pneg %p1618_p7 }
  0x45   : > { %p1407_p0 = scmp.lt.u32.totalorder %s1616_s26, %s1710_s0  ;;  %p1408_p2 = scmp.lt.u32.totalorder %s1406_s5, %s1401_s29 }
  0x46   : > { %p1404_p12 = pnand %p1403_p11, %p1402_p10  ;;  %p1410_p6 = scmp.lt.u32.totalorder %s1401_s29, %s1616_s26 }
  0x47   : > { %p1409_p3 = por %p1408_p2, %p1407_p0 }
  0x48   : > { %p1405_p13 = pneg %p1404_p12 }
  0x49   : > { %p1411_p9 = por %p1410_p6, %p1409_p3 }
  0x4b   : > { %p1412_p8 = pnand %p1411_p9, %p1405_p13 }
  0x4d   : > { %1415 = shalt.err (!%p1412_p8)
}
  0x4e   : > { %s1416_s25 = scalar_lea.vmem %s1622_s10, 2048  ;;  %s1475_s9 = smov [#allocation2]  }
  0x4f   : > { %p1417_p1 = scmp.ne.s32.totalorder %s1622_s10, %s1416_s25  ;;  %s1421_s13 = sshll.u32 %s1475_s9, 4  ;;  %s1422_s13 = int_to_ptr.vmem [resolvable:$false] %s1421_s13 }
  0x50   : > { %s1423_s14 = scalar_lea.vmem %s1422_s13, 4096  ;;  %p1424_p10 = scmp.lt.s32.totalorder %s1622_s10, %s1422_s13 }
  0x51   : > { %p1419_p4 = pnand %p1417_p1, %p1403_p11  ;;  %p1425_p12 = scmp.lt.s32.totalorder %s1423_s14, %s1416_s25 }
  0x53   : > { %p1420_p5 = pneg %p1419_p4  ;;  %p1426_p0 = por %p1425_p12, %p1424_p10 }
  0x55   : > { %p1427_p2 = pnand %p1426_p0, %p1420_p5 }
  0x57   : > { %1430 = shalt.err (!%p1427_p2)
}
  0x58   : > { %s1476_s15 = smov 256   ;;  %s1477_s23 = smov 16  }
  0x59   : > { %1237 = dma.hbm_to_vmem [thread:$0]  (!%p1618_p7), %s1616_s26, 2048, %s1622_s10, %s1624_s28, %s1476_s15, %s1476_s15, %s1477_s23  }
  0x5a   : > { %p1724_p11 = scmp.ne.s32.totalorder %s1721_s22, 0 }
  0x5b   : > { %s206_s27 = sand.u32 (!%p1724_p11), 1, %s1461_s16   ;;  %p1725_p13 = scmp.ne.s32.totalorder (!%p1724_p11), %s1720_s21, 0 }
  0x5c   : > { %204 = sbr.rel (%p1724_p11) target bundleno = 751 (0x2ef), region = 36  ;;  %s1019_s29 = sshll.u32 (!%p1724_p11), %s206_s27, 7 }
  0x5d   : > { %s207_s30 = scalar_lea.sflag (!%p1724_p11), [#allocation3], %s206_s27  ;;  %s1655_s24 = scalar_lea.vmem (!%p1724_p11), [#allocation2], %s1019_s29 }
  0x63   : > { %1448 = dma.done.wait (%p1725_p13), %s207_s30, 2048  }
  0x64   : > { %1450 = vsyncadd (%p1725_p13), %s207_s30, 4294965248  ;;  %p1726_p3 = scmp.ne.s32.totalorder %s1719_s20, 0 }
  0x66   : > { %1452 = dma.done.wait (%p1726_p3), [#allocation5], 5120  }
  0x67   : > { %1454 = vsyncadd (%p1726_p3), [#allocation5], 4294962176  ;;  %v1281_v0 = vld [vmem:[#allocation4 + $0x40] sm:$0xff]   ;;  %v1285_v4 = vld [vmem:[#allocation4 + $0x48] sm:$0xff]   ;;  %s1022_s22 = sshll.u32 %s1008_s19, 3  ;;  %vm913_vm0 = vcmask 7168  }
  0x68   : > { %v1282_v1 = vld [vmem:[#allocation4 + $0xc0] sm:$0xff]   ;;  %1085 = vmatprep.subr.bf16.mxu0 %v1281_v0  ;;  %v1286_v5 = vld [vmem:[#allocation4 + $0xc8] sm:$0xff]   ;;  %v1289_v8 = vld [vmem:[#allocation4 + $0x50] sm:$0xff]   ;;  %p245_p7 = scmp.lt.s32.totalorder %s1022_s22, 31 }
  0x69   : > { %v1283_v2 = vld [vmem:[#allocation4] sm:$0xff]   ;;  %1125 = vmatprep.subr.bf16.mxu1 %v1282_v1  ;;  %v1287_v6 = vld [vmem:[#allocation4 + $0x8] sm:$0xff]   ;;  %v1290_v9 = vld [vmem:[#allocation4 + $0xd0] sm:$0xff]  }
  0x6a   : > { %v1284_v3 = vld [vmem:[#allocation4 + $0x80] sm:$0xff]   ;;  %1086 = vmatpush3.bf16.msra.mxu0 %v1283_v2  ;;  %v1288_v7 = vld [vmem:[#allocation4 + $0x88] sm:$0xff]   ;;  %v1291_v10 = vld [vmem:[#allocation4 + $0x10] sm:$0xff]   ;;  %s1732_s22 = smov (!%p245_p7, %s1022_s22), 31 }
  0x6b   : > { %1126 = vmatpush3.bf16.msra.mxu1 %v1284_v3  ;;  %1087 = vmatprep.subr.bf16.mxu0 %v1285_v4  ;;  %v1292_v11 = vld [vmem:[#allocation4 + $0x90] sm:$0xff]   ;;  %v1293_v12 = vld [vmem:[#allocation4 + $0x58] sm:$0xff]   ;;  %v1297_v16 = vld [vmem:[#allocation4 + $0x60] sm:$0xff]   ;;  %s1023_s26 = sshll.u32 %s1732_s22, 3 }
  0x6c   : > { %1127 = vmatprep.subr.bf16.mxu1 %v1286_v5  ;;  %v1294_v13 = vld [vmem:[#allocation4 + $0xd8] sm:$0xff]   ;;  %v1298_v17 = vld [vmem:[#allocation4 + $0xe0] sm:$0xff]   ;;  %v1301_v20 = vld [vmem:[#allocation4 + $0x68] sm:$0xff]   ;;  %s248_s28 = scalar_lea.vmem %s1714_s4, %s1023_s26 }
  0x6d   : > { %v1295_v14 = vld [vmem:[#allocation4 + $0x18] sm:$0xff]   ;;  %v1299_v18 = vld [vmem:[#allocation4 + $0x20] sm:$0xff]   ;;  %v1302_v21 = vld [vmem:[#allocation4 + $0xe8] sm:$0xff]  }
  0x6e   : > { %1088 = vmatpush3.bf16.msra.mxu0 %v1287_v6  ;;  %v1296_v15 = vld [vmem:[#allocation4 + $0x98] sm:$0xff]   ;;  %v1300_v19 = vld [vmem:[#allocation4 + $0xa0] sm:$0xff]   ;;  %v1303_v22 = vld [vmem:[#allocation4 + $0x28] sm:$0xff]  }
  0x6f   : > { %1128 = vmatpush3.bf16.msra.mxu1 %v1288_v7  ;;  %1089 = vmatprep.subr.bf16.mxu0 %v1289_v8  ;;  %v1304_v23 = vld [vmem:[#allocation4 + $0xa8] sm:$0xff]   ;;  %v1305_v24 = vld [vmem:[#allocation4 + $0x70] sm:$0xff]   ;;  %v1309_v28 = vld [vmem:[#allocation4 + $0x78] sm:$0xff]  }
  0x70   : > { %1129 = vmatprep.subr.bf16.mxu1 %v1290_v9  ;;  %v1306_v25 = vld [vmem:[#allocation4 + $0xf0] sm:$0xff]   ;;  %v1310_v29 = vld [vmem:[#allocation4 + $0xf8] sm:$0xff]   ;;  %v1337_v42 = vld [vmem:[#allocation6] sm:$0xff]  }
  0x71   : > { %v1307_v26 = vld [vmem:[#allocation4 + $0x30] sm:$0xff]   ;;  %v1311_v30 = vld [vmem:[#allocation4 + $0x38] sm:$0xff]   ;;  %v1338_v43 = vld [vmem:[#allocation6 + $0x8] sm:$0xff]  }
  0x72   : > { %1090 = vmatpush3.bf16.msra.mxu0 %v1291_v10  ;;  %v1308_v27 = vld [vmem:[#allocation4 + $0xb0] sm:$0xff]   ;;  %v1312_v31 = vld [vmem:[#allocation4 + $0xb8] sm:$0xff]   ;;  %v1341_v52 = vld [vmem:[#allocation6 + $0x20] sm:$0xff]  }
  0x73   : > { %1130 = vmatpush3.bf16.msra.mxu1 %v1292_v11  ;;  %1091 = vmatprep.subr.bf16.mxu0 %v1293_v12  ;;  %v1313_v32 = vld [vmem:[%s1655_s24] ss:$16 sps:$4 sm:$0xff]   ;;  %v1315_v33 = vld [vmem:[%s1655_s24 + $0x4] ss:$16 sps:$4 sm:$0xff]   ;;  %v1316_v34 = vld [vmem:[%s1655_s24 + $0x8] ss:$16 sps:$4 sm:$0xff]  }
  0x74   : > { %1131 = vmatprep.subr.bf16.mxu1 %v1294_v13  ;;  %v1318_v35 = vld [vmem:[%s1655_s24 + $0xc] ss:$16 sps:$4 sm:$0xff]   ;;  %635 = vmatprep.mubr.bf16.mxu0 %v1315_v33  ;;  %v1319_v36 = vld [vmem:[%s1655_s24 + $0x24] ss:$16 sps:$4 sm:$0xff]   ;;  %v1323_v38 = vld [vmem:[%s1655_s24 + $0x20] ss:$16 sps:$4 sm:$0xff]  }
  0x75   : > { %700 = vmatprep.mubr.bf16.mxu1 %v1318_v35  ;;  %v1321_v37 = vld [vmem:[%s1655_s24 + $0x2c] ss:$16 sps:$4 sm:$0xff]   ;;  %v1324_v39 = vld [vmem:[%s1655_s24 + $0x28] ss:$16 sps:$4 sm:$0xff]   ;;  %v1325_v40 = vld [vmem:[%s1655_s24 + $0x44] ss:$16 sps:$4 sm:$0xff]  }
  0x76   : > { %1092 = vmatpush3.bf16.msra.mxu0 %v1295_v14  ;;  %v1327_v41 = vld [vmem:[%s1655_s24 + $0x4c] ss:$16 sps:$4 sm:$0xff]   ;;  %v1329_v44 = vld [vmem:[%s1655_s24 + $0x40] ss:$16 sps:$4 sm:$0xff]   ;;  %v1330_v46 = vld [vmem:[%s1655_s24 + $0x48] ss:$16 sps:$4 sm:$0xff]  }
  0x77   : > { %1132 = vmatpush3.bf16.msra.mxu1 %v1296_v15  ;;  %1093 = vmatprep.subr.bf16.mxu0 %v1297_v16  ;;  %v1339_v45 = vld [vmem:[#allocation6 + $0x10] sm:$0xff]   ;;  %v1333_v48 = vld [vmem:[%s1655_s24 + $0x6c] ss:$16 sps:$4 sm:$0xff]   ;;  %v1336_v50 = vld [vmem:[%s1655_s24 + $0x68] ss:$16 sps:$4 sm:$0xff]  }
  0x78   : > { %1133 = vmatprep.subr.bf16.mxu1 %v1298_v17  ;;  %v1331_v47 = vld [vmem:[%s1655_s24 + $0x64] ss:$16 sps:$4 sm:$0xff]   ;;  %v1335_v49 = vld [vmem:[%s1655_s24 + $0x60] ss:$16 sps:$4 sm:$0xff]   ;;  %v1340_v51 = vld [vmem:[#allocation6 + $0x18] sm:$0xff]  }
  0x79   : > { %v1342_v53 = vld [vmem:[#allocation6 + $0x28] sm:$0xff]   ;;  %v1343_v54 = vld [vmem:[#allocation6 + $0x30] sm:$0xff]   ;;  %v1344_v55 = vld [vmem:[#allocation6 + $0x38] sm:$0xff]  }
  0x7a   : > { %1094 = vmatpush3.bf16.msra.mxu0 %v1299_v18 }
  0x7b   : > { %1134 = vmatpush3.bf16.msra.mxu1 %v1300_v19  ;;  %1095 = vmatprep.subr.bf16.mxu0 %v1301_v20 }
  0x7c   : > { %1135 = vmatprep.subr.bf16.mxu1 %v1302_v21 }
  0x7e   : > { %1096 = vmatpush3.bf16.msra.mxu0 %v1303_v22 }
  0x7f   : > { %1136 = vmatpush3.bf16.msra.mxu1 %v1304_v23  ;;  %1097 = vmatprep.subr.bf16.mxu0 %v1305_v24 }
  0x80   : > { %1137 = vmatprep.subr.bf16.mxu1 %v1306_v25 }
  0x82   : > { %1098 = vmatpush3.bf16.msra.mxu0 %v1307_v26 }
  0x83   : > { %1138 = vmatpush3.bf16.msra.mxu1 %v1308_v27  ;;  %1099 = vmatprep.subr.bf16.mxu0 %v1309_v28 }
  0x84   : > { %1139 = vmatprep.subr.bf16.mxu1 %v1310_v29 }
  0x86   : > { %1100 = vmatpush3.bf16.msra.mxu0 %v1311_v30 }
  0x87   : > { %1140 = vmatpush3.bf16.msra.mxu1 %v1312_v31  ;;  %1177 = vmatprep.subr.bf16.mxu0 %v1337_v42 }
  0x88   : > { %1201 = vmatprep.subr.bf16.mxu1 %v1337_v42 }
  0x89   : > { %636 = vmatmul.mubr.bf16.vlgmr.msra.gmra.mrb[0].mxu0 %v1313_v32 }
  0x8a   : > { %701 = vmatmul.mubr.bf16.vlgmr.msra.gmra.mrb[0].mxu1 %v1316_v34  ;;  %643 = vmatprep.mubr.bf16.mxu0 %v1319_v36 }
  0x8b   : > { %708 = vmatprep.mubr.bf16.mxu1 %v1321_v37  ;;  %1178 = vmatpush3.bf16.msra.mxu0 %v1337_v42 }
  0x8c   : > { %1179 = vmatprep.subr.bf16.mxu0 %v1338_v43  ;;  %1209 = vmatpush3.bf16.msra.mxu1 %v1337_v42 }
  0x8d   : > { %1202 = vmatprep.subr.bf16.mxu1 %v1338_v43 }
  0x8f   : > { %1180 = vmatpush3.bf16.msra.mxu0 %v1338_v43 }
  0x90   : > { %1181 = vmatprep.subr.bf16.mxu0 %v1339_v45  ;;  %1210 = vmatpush3.bf16.msra.mxu1 %v1338_v43 }
  0x91   : > { %644 = vmatmul.mubr.bf16.gmra.mrb[4].mxu0 %v1323_v38  ;;  %1203 = vmatprep.subr.bf16.mxu1 %v1339_v45 }
  0x92   : > { %709 = vmatmul.mubr.bf16.gmra.mrb[4].mxu1 %v1324_v39  ;;  %651 = vmatprep.mubr.bf16.mxu0 %v1325_v40 }
  0x93   : > { %716 = vmatprep.mubr.bf16.mxu1 %v1327_v41  ;;  %1182 = vmatpush3.bf16.msra.mxu0 %v1339_v45 }
  0x94   : > { %1211 = vmatpush3.bf16.msra.mxu1 %v1339_v45  ;;  %1183 = vmatprep.subr.bf16.mxu0 %v1340_v51 }
  0x95   : > { %1204 = vmatprep.subr.bf16.mxu1 %v1340_v51 }
  0x97   : > { %1184 = vmatpush3.bf16.msra.mxu0 %v1340_v51 }
  0x98   : > { %1212 = vmatpush3.bf16.msra.mxu1 %v1340_v51  ;;  %1185 = vmatprep.subr.bf16.mxu0 %v1341_v52 }
  0x99   : > { %652 = vmatmul.mubr.bf16.gmra.mrb[8].mxu0 %v1329_v44  ;;  %1205 = vmatprep.subr.bf16.mxu1 %v1341_v52 }
  0x9a   : > { %717 = vmatmul.mubr.bf16.gmra.mrb[8].mxu1 %v1330_v46  ;;  %659 = vmatprep.mubr.bf16.mxu0 %v1331_v47 }
  0x9b   : > { %724 = vmatprep.mubr.bf16.mxu1 %v1333_v48  ;;  %1186 = vmatpush3.bf16.msra.mxu0 %v1341_v52 }
  0x9c   : > { %1213 = vmatpush3.bf16.msra.mxu1 %v1341_v52  ;;  %1187 = vmatprep.subr.bf16.mxu0 %v1342_v53 }
  0x9d   : > { %1206 = vmatprep.subr.bf16.mxu1 %v1342_v53 }
  0x9f   : > { %1188 = vmatpush3.bf16.msra.mxu0 %v1342_v53 }
  0xa0   : > { %1214 = vmatpush3.bf16.msra.mxu1 %v1342_v53  ;;  %1189 = vmatprep.subr.bf16.mxu0 %v1343_v54 }
  0xa1   : > { %660 = vmatmul.mubr.bf16.gmra.mrb[12].mxu0 %v1335_v49  ;;  %1207 = vmatprep.subr.bf16.mxu1 %v1343_v54 }
  0xa2   : > { %725 = vmatmul.mubr.bf16.gmra.mrb[12].mxu1 %v1336_v50 }
  0xa3   : > { %1190 = vmatpush3.bf16.msra.mxu0 %v1343_v54 }
  0xa4   : > { %1215 = vmatpush3.bf16.msra.mxu1 %v1343_v54  ;;  %1191 = vmatprep.subr.bf16.mxu0 %v1344_v55 }
  0xa5   : > { %1208 = vmatprep.subr.bf16.mxu1 %v1344_v55 }
  0xa7   : > { %1192 = vmatpush3.bf16.msra.mxu0 %v1344_v55 }
  0xa8   : > { %1216 = vmatpush3.bf16.msra.mxu1 %v1344_v55 }
 0x15c   : > { %v1101_v56 = vpop.f32.mrb[0].mxu0 }
 0x15d   : > { %v1141_v57 = vpop.f32.mrb[0].mxu1  ;;  %v1102_v58 = vpop.f32.mrb[1].mxu0 }
 0x15e   : > { %v1103_v59 = vadd.f32 %v1102_v58, %v1101_v56  ;;  %v1142_v60 = vpop.f32.mrb[1].mxu1  ;;  %v1104_v61 = vpop.f32.mrb[2].mxu0 }
 0x15f   : > { %v1143_v62 = vadd.f32 %v1142_v60, %v1141_v57  ;;  %v1144_v63 = vpop.f32.mrb[2].mxu1  ;;  %v1105_v0 = vpop.f32.mrb[3].mxu0 }
 0x160   : > { %v1106_v1 = vadd.f32 %v1105_v0, %v1104_v61  ;;  %v1145_v2 = vpop.f32.mrb[3].mxu1  ;;  %v1080_v61 = vld [vmem:[%s1713_s3] ss:$0 sm:$0xff] }
 0x161   : > { %v703_v3 = vadd.f32 %v1143_v62, %v1103_v59  ;;  %v1146_v4 = vadd.f32 %v1145_v2, %v1144_v63 }
 0x163   : > { %v706_v5 = vadd.f32 %v1146_v4, %v1106_v1  ;;  %v733_v7 = vmax.f32 %v703_v3, 0.0 }
 0x164   : > { %v1107_v6 = vpop.f32.mrb[4].mxu0 }
 0x165   : > { %v734_v8 = vmax.f32 %v706_v5, 0.0  ;;  %v1147_v9 = vpop.f32.mrb[4].mxu1  ;;  %v1108_v10 = vpop.f32.mrb[5].mxu0 }
 0x166   : > { %v1109_v11 = vadd.f32 %v1108_v10, %v1107_v6  ;;  %v1148_v12 = vpop.f32.mrb[5].mxu1  ;;  %v1110_v13 = vpop.f32.mrb[6].mxu0 }
 0x167   : > { %v1149_v14 = vadd.f32 %v1148_v12, %v1147_v9  ;;  %v1150_v15 = vpop.f32.mrb[6].mxu1  ;;  %v1111_v16 = vpop.f32.mrb[7].mxu0  ;;  %v741_v17 = vpack.c.bf16 %v734_v8, %v733_v7 }
 0x168   : > { %v1112_v18 = vadd.f32 %v1111_v16, %v1110_v13  ;;  %v1151_v19 = vpop.f32.mrb[7].mxu1 }
 0x169   : > { %v711_v20 = vadd.f32 %v1149_v14, %v1109_v11  ;;  %v1152_v21 = vadd.f32 %v1151_v19, %v1150_v15  ;;  %1193 = vmatprep.mubr.bf16.mxu0 %v741_v17 }
 0x16b   : > { %v714_v22 = vadd.f32 %v1152_v21, %v1112_v18  ;;  %v735_v24 = vmax.f32 %v711_v20, 0.0 }
 0x16c   : > { %v1113_v23 = vpop.f32.mrb[8].mxu0 }
 0x16d   : > { %v736_v25 = vmax.f32 %v714_v22, 0.0  ;;  %v1153_v26 = vpop.f32.mrb[8].mxu1  ;;  %v1114_v27 = vpop.f32.mrb[9].mxu0 }
 0x16e   : > { %v1115_v28 = vadd.f32 %v1114_v27, %v1113_v23  ;;  %v1154_v29 = vpop.f32.mrb[9].mxu1  ;;  %v1116_v30 = vpop.f32.mrb[10].mxu0 }
 0x16f   : > { %v742_v31 = vpack.c.bf16 %v736_v25, %v735_v24  ;;  %v1155_v32 = vadd.f32 %v1154_v29, %v1153_v26  ;;  %v1156_v33 = vpop.f32.mrb[10].mxu1  ;;  %v1117_v34 = vpop.f32.mrb[11].mxu0 }
 0x170   : > { %v1118_v35 = vadd.f32 %v1117_v34, %v1116_v30  ;;  %v1157_v36 = vpop.f32.mrb[11].mxu1 }
 0x171   : > { %v719_v37 = vadd.f32 %v1155_v32, %v1115_v28  ;;  %v1158_v38 = vadd.f32 %v1157_v36, %v1156_v33  ;;  %1194 = vmatmul.mubr.bf16.vlgmr.msra.gmra.mrb[16].mxu0 %v742_v31 }
 0x173   : > { %v722_v39 = vadd.f32 %v1158_v38, %v1118_v35  ;;  %v737_v41 = vmax.f32 %v719_v37, 0.0 }
 0x174   : > { %v1119_v40 = vpop.f32.mrb[12].mxu0 }
 0x175   : > { %v738_v42 = vmax.f32 %v722_v39, 0.0  ;;  %v1159_v43 = vpop.f32.mrb[12].mxu1  ;;  %v1120_v44 = vpop.f32.mrb[13].mxu0 }
 0x176   : > { %v1121_v45 = vadd.f32 %v1120_v44, %v1119_v40  ;;  %v1160_v46 = vpop.f32.mrb[13].mxu1  ;;  %v1122_v47 = vpop.f32.mrb[14].mxu0 }
 0x177   : > { %v1161_v48 = vadd.f32 %v1160_v46, %v1159_v43  ;;  %v1162_v49 = vpop.f32.mrb[14].mxu1  ;;  %v1123_v50 = vpop.f32.mrb[15].mxu0  ;;  %v743_v51 = vpack.c.bf16 %v738_v42, %v737_v41 }
 0x178   : > { %v1124_v52 = vadd.f32 %v1123_v50, %v1122_v47  ;;  %v1163_v53 = vpop.f32.mrb[15].mxu1 }
 0x179   : > { %v727_v54 = vadd.f32 %v1161_v48, %v1121_v45  ;;  %v1164_v55 = vadd.f32 %v1163_v53, %v1162_v49  ;;  %1197 = vmatprep.mubr.bf16.mxu1 %v743_v51 }
 0x17b   : > { %v730_v56 = vadd.f32 %v1164_v55, %v1124_v52  ;;  %v739_v57 = vmax.f32 %v727_v54, 0.0 }
 0x17d   : > { %v740_v58 = vmax.f32 %v730_v56, 0.0 }
 0x17f   : > { %v744_v59 = vpack.c.bf16 %v740_v58, %v739_v57 }
 0x181   : > { %1198 = vmatmul.mubr.bf16.vlgmr.msra.gmra.mrb[16].mxu1 %v744_v59 }
 0x244   : > { %v1195_v60 = vpop.f32.mrb[16].mxu0 }
 0x245   : > { %v876_v62 = vmax.f32 %v1195_v60, 0.0  ;;  %v843_v63 = vpop.f32.mrb[17].mxu0 }
 0x246   : > { %v874_v0 = vmax.f32 %v843_v63, 0.0  ;;  %v1196_v1 = vpop.f32.mrb[18].mxu0 }
 0x247   : > { %v877_v2 = vmax.f32 %v1196_v1, 0.0  ;;  %v846_v3 = vpop.f32.mrb[19].mxu0  ;;  %v891_v4 = vmul.f32 %v1080_v61, %v876_v62 }
 0x248   : > { %v875_v5 = vmax.f32 %v846_v3, 0.0  ;;  %v889_v6 = vmul.f32 %v1080_v61, %v874_v0 }
 0x249   : > { %901 = vadd.xlane.f32.xlu1 %v891_v4  ;;  %v892_v7 = vmul.f32 %v1080_v61, %v877_v2 }
 0x24a   : > { %897 = vadd.xlane.f32.xlu0 %v889_v6  ;;  %v890_v8 = vmul.f32 %v1080_v61, %v875_v5 }
 0x24d   : > { %903 = vadd.xlane.f32.xlu1 %v892_v7 }
 0x24e   : > { %899 = vadd.xlane.f32.xlu0 %v890_v8 }
 0x254   : > { %v1199_v9 = vpop.f32.mrb[16].mxu1 }
 0x255   : > { %v859_v10 = vpop.f32.mrb[17].mxu1  ;;  %v880_v14 = vmax.f32 %v1199_v9, 0.0 }
 0x256   : > { %v878_v11 = vmax.f32 %v859_v10, 0.0  ;;  %v1200_v12 = vpop.f32.mrb[18].mxu1 }
 0x257   : > { %v862_v13 = vpop.f32.mrb[19].mxu1  ;;  %v881_v17 = vmax.f32 %v1200_v12, 0.0  ;;  %v895_v19 = vmul.f32 %v1080_v61, %v880_v14 }
 0x258   : > { %v879_v15 = vmax.f32 %v862_v13, 0.0  ;;  %v893_v16 = vmul.f32 %v1080_v61, %v878_v11 }
 0x259   : > { %v896_v20 = vmul.f32 %v1080_v61, %v881_v17 }
 0x25a   : > { %905 = vadd.xlane.f32.xlu0 %v893_v16  ;;  %v894_v18 = vmul.f32 %v1080_v61, %v879_v15 }
 0x25c   : > { %907 = vadd.xlane.f32.xlu1 %v894_v18 }
 0x25e   : > { %909 = vadd.xlane.f32.xlu0 %v895_v19 }
 0x260   : > { %911 = vadd.xlane.f32.xlu1 %v896_v20 }
 0x2d6   : > { %v902_v21 = vpop.xlane.xlu1 %901 }
 0x2d7   : > { %916 = vst.msk [vmem:[%s248_s28 + $0x10] sm:$0xff] %vm913_vm0, %v902_v21  ;;  %v898_v22 = vpop.xlane.xlu0 %897 }
 0x2d8   : > { %914 = vst.msk [vmem:[%s248_s28] sm:$0xff] %vm913_vm0, %v898_v22 }
 0x2da   : > { %v904_v23 = vpop.xlane.xlu1 %903 }
 0x2db   : > { %917 = vst.msk [vmem:[%s248_s28 + $0x18] sm:$0xff] %vm913_vm0, %v904_v23  ;;  %v900_v24 = vpop.xlane.xlu0 %899 }
 0x2dc   : > { %915 = vst.msk [vmem:[%s248_s28 + $0x8] sm:$0xff] %vm913_vm0, %v900_v24 }
 0x2e7   : > { %v906_v25 = vpop.xlane.xlu0 %905 }
 0x2e8   : > { %918 = vst.msk [vmem:[%s248_s28 + $0x20] sm:$0xff] %vm913_vm0, %v906_v25 }
 0x2e9   : > { %v908_v26 = vpop.xlane.xlu1 %907 }
 0x2ea   : > { %919 = vst.msk [vmem:[%s248_s28 + $0x28] sm:$0xff] %vm913_vm0, %v908_v26 }
 0x2eb   : > { %v910_v27 = vpop.xlane.xlu0 %909 }
 0x2ec   : > { %920 = vst.msk [vmem:[%s248_s28 + $0x30] sm:$0xff] %vm913_vm0, %v910_v27 }
 0x2ed   : > { %v912_v28 = vpop.xlane.xlu1 %911 }
 0x2ee   : > { %921 = vst.msk [vmem:[%s248_s28 + $0x38] sm:$0xff] %vm913_vm0, %v912_v28 }
 0x2ef PF: > { %p15_p6 = scmp.ge.s32.totalorder %s1599_s7, 6   ;;  %s1727_s15 = smov %s1461_s16 }
 0x2f0   : > { %s1728_s16 = smov %s1465_s17  ;;  %s1729_s17 = smov %s1610_s12 }
 0x2f1   : > { %s1730_s18 = smov %s1599_s7  ;;  %17 = sbr.rel (!%p15_p6) target bundleno = 4 (0x4), region = 84 }
 0x2f8   :  { %944 = vsyncpa [#allocation3], 1 }
 0x2f9   :  { %946 = vsyncpa [#allocation3 + $0x1], 1 }
 0x2fa   :  { %947 = vsyncpa [#allocation5], 1 }

</bundles_post_ra>
